<compile_context>
chip_gen: v5e
topology: v5e:2x2
jax: 0.10.0
libtpu: 0.0.40
codegen_flags: <defaults>
</compile_context>

<pallas_src>
import jax
import jax.numpy as jnp
from jax.experimental import pallas as pl
from jax.experimental.pallas import tpu as pltpu


_LANE = 128
_MIN_PALLAS_BYTES = 2 * 1024 * 1024      # below this, let XLA fuse the permute
_MIN_TILE_BYTES = 512 * 1024             # don't shrink tiles below this for parallelism
_FALLBACK_TILE_BUDGET = 4 * 1024 * 1024  # per-buffer budget when hw query fails


def _detect_vmem_bytes():
    try:
        info = pltpu.get_tpu_info()
        v = getattr(info, "vmem_capacity_bytes", None)
        if v:
            return int(v)
    except Exception:
        pass
    return None


def _auto_tile_budget(vmem_bytes):
    if vmem_bytes is None:
        return _FALLBACK_TILE_BUDGET
    # Keep 2x(in)+2x(out) double-buffered tiles under ~1/4 of physical VMEM:
    # v5e/v6e (128 MiB) -> 8 MiB/buffer; v7x (64 MiB) -> 4 MiB/buffer.
    return int(min(8 << 20, max(1 << 20, vmem_bytes // 16)))


def _block_for(size, align, cap):
    """Block for one minor dim: the full extent if it fits under `cap`,
    otherwise the largest multiple of `align` <= cap (at least `align`).
    No divisibility requirement: ragged last blocks are masked by Pallas."""
    if size <= cap:
        return int(size)
    return int(max(align, (cap // align) * align))


def _encourage_parallelism(blk, shape, aligns, itemsize,
                           min_steps=4, min_tile_bytes=_MIN_TILE_BYTES):
    """Shrink the largest reducible block so the grid has >= min_steps steps
    (lets v7x's two TensorCores split the copy), without dropping tiles below
    min_tile_bytes unless the grid would otherwise be a single step."""
    def steps():
        s = 1
        for d, b in zip(shape, blk):
            s *= -(-d // b)
        return s

    while steps() < min_steps:
        best = None
        for a, al in enumerate(aligns):
            if blk[a] <= al:
                continue
            new = max(al, ((blk[a] // 2) // al) * al)
            if new >= blk[a]:
                continue
            if best is None or blk[a] > blk[best[0]]:
                best = (a, new)
        if best is None:
            break
        a, new = best
        tile = 1
        for b in blk:
            tile *= b
        if (tile // blk[a]) * new * itemsize < min_tile_bytes and steps() >= 2:
            break
        blk[a] = new
    return blk


def _copy_kernel(x_ref, o_ref):
    # The axis permutation is done entirely by the BlockSpec index maps (DMA
    # reordering).  In- and out-tiles differ only in the placement of size-1
    # leading dims, so the reshape is a zero-cost relayout (last two dims,
    # and hence the (sublane, lane) layout, are unchanged).
    v = x_ref[...]
    o_ref[...] = v if v.shape == o_ref.shape else v.reshape(o_ref.shape)


def _transpose2d_kernel(x_ref, o_ref):
    # Leading dims are squeezed away by the BlockSpecs, so this is an explicit
    # 2D lane<->sublane transpose of a lane-dense tile (native vxpose path).
    o_ref[...] = x_ref[...].T


def pallas_permute(x, dims, *, min_pallas_bytes=_MIN_PALLAS_BYTES,
                   tile_budget_bytes=None):
    """torch.permute(x, dims) as a tiled, pipelined Pallas TPU kernel."""
    n = x.ndim
    dims = tuple(int(d) % max(n, 1) for d in dims)
    assert sorted(dims) == list(range(n)), "dims must be a permutation"

    if n == 0 or dims == tuple(range(n)):
        return x                                        # identity permutation

    itemsize = jnp.dtype(x.dtype).itemsize
    nbytes = x.size * itemsize

    # Tiny tensors: kernel launch + pipeline ramp cost more than the copy;
    # let XLA fold the permute into its consumer instead.
    if nbytes < min_pallas_bytes:
        return jnp.transpose(x, dims)

    out_shape = tuple(x.shape[d] for d in dims)
    inv = [0] * n
    for i, d in enumerate(dims):
        inv[d] = i

    vmem_bytes = _detect_vmem_bytes()
    budget_bytes = tile_budget_bytes or _auto_tile_budget(vmem_bytes)
    budget_elems = max(1, budget_bytes // itemsize)

    # dtype-aware sublane minimum (f32: 8, bf16: 16, int8/fp8: 32).
    sub_align = max(8, 32 // itemsize)

    is_copy = n >= 2 and dims[-2:] == (n - 2, n - 1)        # minor dims untouched
    is_minor_swap = n >= 2 and dims[-2:] == (n - 1, n - 2)  # last two swapped

    if not (is_copy or is_minor_swap):
        # TODO(synk): exotic permutations that pull a far-leading axis into the
        # minor dims need Mosaic's generic N-D relayout; fall back to XLA there.
        return jnp.transpose(x, dims)

    blk = [1] * n
    if is_copy:
        # Minor dims keep their positions: lane-dense blocks, sized to budget.
        blk[n - 1] = _block_for(x.shape[n - 1], _LANE,
                                max(_LANE, budget_elems // sub_align))
        blk[n - 2] = _block_for(x.shape[n - 2], sub_align,
                                max(sub_align, budget_elems // blk[n - 1]))
        aligns = [1] * (n - 2) + [sub_align, _LANE]

        # Grow leading-axis blocks (innermost output leading axis first, so
        # output DMAs stay contiguous) up to the byte budget.  Growth is only
        # allowed while the permutation preserves the relative order of
        # >1-sized blocks -> the kernel stays a pure copy.
        cur = blk[n - 1] * blk[n - 2]
        grown = []
        for j in range(n - 3, -1, -1):           # output leading axes, inner->outer
            a = dims[j]                           # corresponding input axis
            room = budget_elems // max(cur, 1)
            if room < 2:
                continue
            if not all((a < b) == (inv[a] < inv[b]) for b in grown):
                continue
            g = int(min(x.shape[a], room))
            if g > 1:
                blk[a] = g
                cur *= g
                grown.append(a)
        kernel = _copy_kernel
        squeeze_leading = False
    else:
        # Genuine minor-dim swap: large 2D lane-dense tiles; leading blocks
        # stay at 1 (and are squeezed) so the kernel is a single 2D transpose.
        blk[n - 1] = _block_for(x.shape[n - 1], _LANE,
                                max(_LANE, budget_elems // _LANE))
        blk[n - 2] = _block_for(x.shape[n - 2], _LANE,
                                max(_LANE, budget_elems // blk[n - 1]))
        aligns = [1] * (n - 2) + [_LANE, _LANE]
        kernel = _transpose2d_kernel
        squeeze_leading = True

    # Keep >= ~4 grid steps so v7x's two TensorCores can split the work.
    blk = _encourage_parallelism(blk, x.shape, aligns, itemsize)

    out_block = [blk[d] for d in dims]
    grid = tuple(pl.cdiv(out_shape[i], out_block[i]) for i in range(n))
    total_steps = 1
    for g in grid:
        total_steps *= g
    if total_steps < 2:
        # A single-step pipeline has no overlap to exploit; let XLA handle it.
        return jnp.transpose(x, dims)

    def in_index_map(*g):
        return tuple(g[inv[a]] for a in range(n))

    def out_index_map(*g):
        return tuple(g)

    if squeeze_leading:
        in_block_spec = tuple([pl.Squeezed()] * (n - 2) + [blk[n - 2], blk[n - 1]])
        out_block_spec = tuple([pl.Squeezed()] * (n - 2) + [blk[n - 1], blk[n - 2]])
    else:
        in_block_spec = tuple(blk)
        out_block_spec = tuple(out_block)

    tile_bytes = itemsize
    for b in blk:
        tile_bytes *= b
    vmem_limit = max(32 << 20, 4 * tile_bytes + (8 << 20))
    if vmem_bytes is not None:
        vmem_limit = min(vmem_limit, max(32 << 20, vmem_bytes // 2))

    return pl.pallas_call(
        kernel,
        out_shape=jax.ShapeDtypeStruct(out_shape, x.dtype),
        grid_spec=pltpu.PrefetchScalarGridSpec(
            num_scalar_prefetch=0,
            grid=grid,
            in_specs=[pl.BlockSpec(in_block_spec, in_index_map)],
            out_specs=pl.BlockSpec(out_block_spec, out_index_map),
        ),
        compiler_params=pltpu.CompilerParams(
            # Every grid step writes a distinct output tile -> all axes are
            # parallel (lets v7x shard the bandwidth-bound copy across 2 TCs).
            dimension_semantics=("parallel",) * n,
            vmem_limit_bytes=int(vmem_limit),
        ),
        cost_estimate=pl.CostEstimate(
            flops=0, transcendentals=0, bytes_accessed=2 * nbytes),
    )(x)


class Permute:
    """Drop-in analogue of the PyTorch module: Permute(dims)(x)."""

    def __init__(self, dims):
        self.dims = tuple(dims)

    def __call__(self, x):
        return pallas_permute(x, self.dims)


if __name__ == "__main__":
    key = jax.random.PRNGKey(0)
    k1, k2, k3, k4, k5 = jax.random.split(key, 5)

    # 1) Encoder pattern: (B, C, T) -> (B, T, C), f32, 2D minor-swap path.
    #    Small shape, so force the Pallas path with a small tile budget.
    x1 = jax.random.normal(k1, (2, 128, 256), dtype=jnp.float32)
    y1 = jax.block_until_ready(
        pallas_permute(x1, (0, 2, 1), min_pallas_bytes=0, tile_budget_bytes=64 * 1024))
    y1_ref = jnp.transpose(x1, (0, 2, 1))
    assert y1.shape == y1_ref.shape and y1.dtype == y1_ref.dtype
    assert bool(jnp.array_equal(y1, y1_ref))

    # 2) Leading-axis permute: (B, H, S, D) -> (H, B, S, D); DMA-copy path with
    #    grown leading blocks.
    x2 = jax.random.normal(k2, (2, 8, 64, 128), dtype=jnp.float32)
    y2 = jax.block_until_ready(
        pallas_permute(x2, (1, 0, 2, 3), min_pallas_bytes=0, tile_budget_bytes=128 * 1024))
    y2_ref = jnp.transpose(x2, (1, 0, 2, 3))
    assert y2.shape == y2_ref.shape and y2.dtype == y2_ref.dtype
    assert bool(jnp.array_equal(y2, y2_ref))

    # 3) bf16 minor swap with packed-dtype tiling.
    x3 = jax.random.normal(k3, (2, 128, 256), dtype=jnp.bfloat16)
    y3 = jax.block_until_ready(
        pallas_permute(x3, (0, 2, 1), min_pallas_bytes=0, tile_budget_bytes=32 * 1024))
    y3_ref = jnp.transpose(x3, (0, 2, 1))
    assert y3.shape == y3_ref.shape and y3.dtype == y3_ref.dtype
    assert bool(jnp.array_equal(y3, y3_ref))

    # 4) Default parameters (auto budget, grid-parallelism adjustment) on a
    #    medium tensor.
    x4 = jax.random.normal(k4, (2, 256, 1024), dtype=jnp.float32)
    y4 = jax.block_until_ready(pallas_permute(x4, (0, 2, 1)))
    y4_ref = jnp.transpose(x4, (0, 2, 1))
    assert y4.shape == y4_ref.shape and y4.dtype == y4_ref.dtype
    assert bool(jnp.array_equal(y4, y4_ref))

    # 5) Exotic / tiny permutes fall back to XLA (module-style API).
    x5 = jax.random.normal(k5, (2, 4, 16, 8), dtype=jnp.float32)
    y5 = jax.block_until_ready(Permute((0, 2, 3, 1))(x5))
    y5_ref = jnp.transpose(x5, (0, 2, 3, 1))
    assert y5.shape == y5_ref.shape and bool(jnp.array_equal(y5, y5_ref))

    print("KERNEL_OK")
</pallas_src>

<mosaic_0001>
module attributes {stable_mosaic.version = 11 : i64} {
  func.func @_transpose2d_kernel(%arg0: i32, %arg1: i32, %arg2: i32, %arg3: memref<1x128x128xf32, #tpu.memory_space<vmem>>, %arg4: memref<1x128x128xf32, #tpu.memory_space<vmem>>) attributes {dimension_semantics = [#tpu.dimension_semantics<parallel>, #tpu.dimension_semantics<parallel>, #tpu.dimension_semantics<parallel>], iteration_bounds = array<i64: 2, 2, 1>, scalar_prefetch = 0 : i64, scratch_operands = 0 : i64, tpu.core_type = #tpu.core_type<tc>, window_params = [{transform_indices = @transform_0, window_bounds = array<i64: 1, 128, 128>}, {transform_indices = @transform_1, window_bounds = array<i64: 1, 128, 128>}]} {
    %c0 = arith.constant 0 : index
    %c0_0 = arith.constant 0 : index
    %c0_1 = arith.constant 0 : index
    %0 = vector.load %arg3[%c0, %c0_0, %c0_1] : memref<1x128x128xf32, #tpu.memory_space<vmem>>, vector<1x128x128xf32>
    %1 = vector.shape_cast %0 : vector<1x128x128xf32> to vector<128x128xf32>
    %2 = tpu.transpose %1, [1, 0] : vector<128x128xf32> -> vector<128x128xf32>
    %c0_2 = arith.constant 0 : index
    %c0_3 = arith.constant 0 : index
    %c0_4 = arith.constant 0 : index
    %3 = vector.load %arg4[%c0_2, %c0_3, %c0_4] : memref<1x128x128xf32, #tpu.memory_space<vmem>>, vector<1x128x128xf32>
    %4 = vector.shape_cast %3 : vector<1x128x128xf32> to vector<128x128xf32>
    %5 = vector.shape_cast %2 : vector<128x128xf32> to vector<1x128x128xf32>
    tpu.vector_store %arg4[%c0_2, %c0_3, %c0_4], %5 {strides = array<i32>} : memref<1x128x128xf32, #tpu.memory_space<vmem>>, vector<1x128x128xf32>,
    return
  }
  func.func @transform_0(%arg0: i32, %arg1: i32, %arg2: i32) -> (i32, i32, i32) {
    %c0_i32 = arith.constant 0 : i32
    return %arg0, %arg2, %arg1 : i32, i32, i32
  }
  func.func @transform_1(%arg0: i32, %arg1: i32, %arg2: i32) -> (i32, i32, i32) {
    %c0_i32 = arith.constant 0 : i32
    return %arg0, %arg1, %arg2 : i32, i32, i32
  }
}

</mosaic_0001>

<bundles_post_ra>
// kernel: tpu_custom_call.1
= control target key start
LH: loop header
LB: loop body
LE: loop exit
PB: predicated region body
PF: predicated region fallthrough
CT: control target
= control target key end

     0   :  { %6 = vsyncpa [#allocation3], 0  ;;  %s775_s0 = inlined_call_operand.hbm [shape: f32[2,128,256], index: 0, kind: input, shape index: {}]   ;;  %s776_s1 = inlined_call_operand.hbm [shape: f32[2,256,128], index: 1, kind: output, shape index: {}]  }
   0x1   :  { %8 = vsyncpa [#allocation3 + $0x1], 0 }
   0x2   :  { %9 = vsyncpa [#allocation4], 0 }
   0x3   :  { %11 = vsyncpa [#allocation4 + $0x1], 0  ;;  %s592_s6 = smov 0   ;;  %s594_s7 = smov 0  }
   0x4   :  { %s596_s8 = smov 0   ;;  %s598_s9 = smov 0  }
   0x5   :  { %s600_s10 = smov 0   ;;  %s602_s11 = smov 0  }
   0x6   :  { %s604_s12 = smov 0   ;;  %s606_s13 = smov 0  }
   0x7 LB: > { %s348_s14 = sadd.s32 4294967295, %s575_s13   ;;  %s349_s15 = sadd.s32 4294967294, %s575_s13   ;;  %s575_s13 = sphi %s606_s13, %s17_s13   ;;  %s571_s12 = sphi %s604_s12, %s790_s12   ;;  %s567_s11 = sphi %s602_s11, %s789_s11   ;;  %s563_s10 = sphi %s600_s10, %s788_s10   ;;  %s559_s9 = sphi %s598_s9, %s787_s9   ;;  %s555_s8 = sphi %s596_s8, %s786_s8   ;;  %s551_s7 = sphi %s594_s7, %s785_s7   ;;  %s547_s6 = sphi %s592_s6, %s784_s6  }
   0x8   : > { %s32_s16 = sadd.s32 1, %s567_s11  ;;  %s36_s17 = sadd.s32 1, %s571_s12 }
   0x9   : > { %p34_p0 = scmp.ge.s32.totalorder %s32_s16, 2  ;;  %s47_s18 = sadd.s32 1, %s555_s8 }
   0xa   : > { %p54_p1 = scmp.ne.s32.totalorder %s555_s8, %s551_s7  ;;  %p55_p2 = scmp.eq.s32.totalorder %s575_s13, 0 }
   0xb   : > { %s792_s16 = smov (%p34_p0, %s32_s16), 0  ;;  %s794_s17 = smov (!%p34_p0, %s36_s17), %s571_s12 }
   0xc   : > { %s43_s19 = ssub.s32 %s567_s11, %s792_s16  ;;  %p645_p3 = por %p55_p2, %p54_p1 }
   0xd   : > { %p38_p4 = scmp.ge.s32.totalorder %s794_s17, 2  ;;  %p60_p5 = scmp.ne.s32.totalorder %s551_s7, %s547_s6 }
   0xe   : > { %p61_p6 = scmp.eq.s32.totalorder %s348_s14, 0  ;;  %p88_p7 = scmp.eq.s32.totalorder %s348_s14, 3 }
   0xf   : > { %s796_s17 = smov (%p38_p4, %s794_s17), 0  ;;  %p94_p10 = scmp.eq.s32.totalorder %s349_s15, 3 }
  0x10   : > { %779 = sst [smem:[#allocation8_spill]] %s796_s17  ;;  %p653_p8 = por %p61_p6, %p60_p5 }
  0x11   : > { %p657_p9 = por %p88_p7, %p54_p1  ;;  %s40_s23 = ssub.s32 %s571_s12, %s796_s17 }
  0x12   : > { %s44_s24 = sor.u32 %s43_s19, %s40_s23  ;;  %p663_p12 = por %p94_p10, %p60_p5 }
  0x13   : > { %p45_p11 = scmp.eq.s32.totalorder %s44_s24, 0  ;;  %p376_p13 = scmp.lt.s32.totalorder %s575_s13, 4 }
  0x14   : > { %s114_s26 = sand.u32 1, %s555_s8   ;;  %s353_s29 = sshll.u32 %s571_s12, 5 }
  0x15   : > { %s670_s27 = scalar_select %p45_p11, %s555_s8, %s47_s18  }
  0x16   : > { %s352_s28 = sshll.u32 %s114_s26, 7  ;;  %s125_s30 = sadd.s32 %s567_s11, %s353_s29 }
  0x17   : > { %s118_s2 = scalar_lea.vmem [#allocation2], %s352_s28  ;;  %s354_s4 = sshll.u32 %s125_s30, 3 }
  0x18   : > { %s130_s3 = sshll.u32 %s118_s2, 4  ;;  %s127_s15 = scalar_lea.hbm %s775_s0, %s354_s4  ;;  %s131_s3 = int_to_ptr.vmem [resolvable:$true] %s130_s3 }
  0x19   : > { %p369_p0 = pnand %p376_p13, %p645_p3  ;;  %s128_s19 = sshll.u32 %s127_s15, 4  ;;  %s129_s19 = int_to_ptr.hbm [resolvable:$true] %s128_s19 }
  0x1a   : > { %s115_s23 = scalar_lea.sflag [#allocation3], %s114_s26  ;;  %s577_s18 = smov 256  }
  0x1b   : > { %s578_s24 = smov 128   ;;  %s579_s17 = smov 8  }
  0x1c   : > { %371 = dma.hbm_to_vmem [thread:$0]  (!%p369_p0), %s129_s19, 2048, %s131_s3, %s115_s23, %s577_s18, %s578_s24, %s579_s17  }
  0x1d   : > { %p355_p1 = scmp.ge.s32.totalorder %s575_s13, 1  ;;  %p138_p2 = scmp.lt.s32.totalorder %s575_s13, 5 }
  0x1f   : > { %p139_p4 = pnand %p355_p1, %p138_p2 }
  0x20   : > { %s682_s28 = sand.u32 (!%p139_p4), 1, %s551_s7  }
  0x21   : > { %142 = sbr.rel (%p139_p4) target bundleno = 329 (0x149), region = 24  ;;  %s356_s20 = sshll.u32 (!%p139_p4), %s682_s28, 7 }
  0x22   : > { %s145_s29 = scalar_lea.sflag (!%p139_p4), [#allocation3], %s682_s28  ;;  %s688_s30 = scalar_lea.vmem (!%p139_p4), [#allocation2], %s356_s20 }
  0x26   : > { %538 = dma.done.wait (%p653_p8), %s145_s29, 2048  }
  0x27   : > { %540 = vsyncadd (%p653_p8), %s145_s29, 4294965248  ;;  %v170_v0 = vld [vmem:[%s688_s30] sm:$0xff]  ;;  %v171_v1 = vld [vmem:[%s688_s30 + $0x8] sm:$0xff]  ;;  %s712_s17 = scalar_lea.vmem [#allocation5], %s356_s20  ;;  %s359_s21 = sshll.u32 %s559_s9, 4 }
  0x28   : > { %186 = vxpose.xlu0.b32.start [1/16] %v170_v0, 128  ;;  %v172_v2 = vld [vmem:[%s688_s30 + $0x10] sm:$0xff]  ;;  %v173_v3 = vld [vmem:[%s688_s30 + $0x18] sm:$0xff]  ;;  %v174_v4 = vld [vmem:[%s688_s30 + $0x20] sm:$0xff]  ;;  %s360_s26 = sshll.u32 %s563_s10, 5  ;;  %s250_s15 = sshll.u32 %s712_s17, 4  ;;  %s251_s15 = int_to_ptr.vmem [resolvable:$true] %s250_s15 }
  0x29   : > { %v175_v5 = vld [vmem:[%s688_s30 + $0x28] sm:$0xff]  ;;  %v176_v6 = vld [vmem:[%s688_s30 + $0x30] sm:$0xff]  ;;  %v177_v7 = vld [vmem:[%s688_s30 + $0x38] sm:$0xff]  ;;  %s247_s2 = sadd.s32 %s360_s26, %s359_s21  ;;  %s235_s23 = scalar_lea.sflag [#allocation4], %s682_s28 }
  0x2a   : > { %v178_v8 = vld [vmem:[%s688_s30 + $0x40] sm:$0xff]  ;;  %v179_v9 = vld [vmem:[%s688_s30 + $0x48] sm:$0xff]  ;;  %v180_v10 = vld [vmem:[%s688_s30 + $0x50] sm:$0xff]  ;;  %s361_s3 = sshll.u32 %s247_s2, 3  ;;  %s497_s20 = scalar_lea.hbm %s776_s1, 512 }
  0x2b   : > { %v181_v11 = vld [vmem:[%s688_s30 + $0x58] sm:$0xff]  ;;  %v182_v12 = vld [vmem:[%s688_s30 + $0x60] sm:$0xff]  ;;  %v183_v13 = vld [vmem:[%s688_s30 + $0x68] sm:$0xff]  ;;  %s249_s14 = scalar_lea.hbm %s776_s1, %s361_s3 }
  0x2c   : > { %v184_v14 = vld [vmem:[%s688_s30 + $0x70] sm:$0xff]  ;;  %v185_v15 = vld [vmem:[%s688_s30 + $0x78] sm:$0xff]  ;;  %s252_s19 = sshll.u32 %s249_s14, 4  ;;  %s253_s19 = int_to_ptr.hbm [resolvable:$true] %s252_s19 }
  0x2d   : > { %s491_s9 = sshra.s32 %s253_s19, 4  ;;  %s492_s9 = int_to_ptr.hbm [resolvable:$true] %s491_s9 }
  0x2e   : > { %s493_s10 = scalar_lea.hbm %s492_s9, 128  ;;  %p498_p7 = scmp.lt.s32.totalorder %s492_s9, %s776_s1 }
  0x2f   : > { %p494_p3 = scmp.ne.s32.totalorder %s492_s9, %s493_s10  ;;  %p499_p8 = scmp.lt.s32.totalorder %s497_s20, %s493_s10 }
  0x30   : > { %187 = vxpose.xlu0.b32.cont [2/16] %v171_v1, 128 }
  0x31   : > { %p495_p5 = pnand %p494_p3, %p657_p9  ;;  %p500_p10 = por %p499_p8, %p498_p7 }
  0x33   : > { %p496_p6 = pneg %p495_p5 }
  0x35   : > { %p501_p11 = pnand %p500_p10, %p496_p6 }
  0x38   : > { %188 = vxpose.xlu0.b32.cont [3/16] %v172_v2, 128 }
  0x40   : > { %189 = vxpose.xlu0.b32.cont [4/16] %v173_v3, 128 }
  0x48   : > { %190 = vxpose.xlu0.b32.cont [5/16] %v174_v4, 128 }
  0x50   : > { %191 = vxpose.xlu0.b32.cont [6/16] %v175_v5, 128 }
  0x58   : > { %192 = vxpose.xlu0.b32.cont [7/16] %v176_v6, 128 }
  0x60   : > { %193 = vxpose.xlu0.b32.cont [8/16] %v177_v7, 128 }
  0x68   : > { %194 = vxpose.xlu0.b32.cont [9/16] %v178_v8, 128 }
  0x70   : > { %195 = vxpose.xlu0.b32.cont [10/16] %v179_v9, 128 }
  0x78   : > { %196 = vxpose.xlu0.b32.cont [11/16] %v180_v10, 128 }
  0x80   : > { %197 = vxpose.xlu0.b32.cont [12/16] %v181_v11, 128 }
  0x88   : > { %198 = vxpose.xlu0.b32.cont [13/16] %v182_v12, 128 }
  0x90   : > { %199 = vxpose.xlu0.b32.cont [14/16] %v183_v13, 128 }
  0x98   : > { %200 = vxpose.xlu0.b32.cont [15/16] %v184_v14, 128 }
  0xa0   : > { %201 = vxpose.xlu0.b32.end [16/16] %v185_v15, 128 }
  0xcc   : > { %v202_v16 = vpop.trf.xlu0 }
  0xcd   : > { %218 = vst [vmem:[%s712_s17] sm:$0xff] %v202_v16 }
  0xd4   : > { %v203_v17 = vpop.trf.xlu0 }
  0xd5   : > { %219 = vst [vmem:[%s712_s17 + $0x8] sm:$0xff] %v203_v17 }
  0xdc   : > { %v204_v18 = vpop.trf.xlu0 }
  0xdd   : > { %220 = vst [vmem:[%s712_s17 + $0x10] sm:$0xff] %v204_v18 }
  0xe4   : > { %v205_v19 = vpop.trf.xlu0 }
  0xe5   : > { %221 = vst [vmem:[%s712_s17 + $0x18] sm:$0xff] %v205_v19 }
  0xec   : > { %v206_v20 = vpop.trf.xlu0 }
  0xed   : > { %222 = vst [vmem:[%s712_s17 + $0x20] sm:$0xff] %v206_v20 }
  0xf4   : > { %v207_v21 = vpop.trf.xlu0 }
  0xf5   : > { %223 = vst [vmem:[%s712_s17 + $0x28] sm:$0xff] %v207_v21 }
  0xfc   : > { %v208_v22 = vpop.trf.xlu0 }
  0xfd   : > { %224 = vst [vmem:[%s712_s17 + $0x30] sm:$0xff] %v208_v22 }
 0x104   : > { %v209_v23 = vpop.trf.xlu0 }
 0x105   : > { %225 = vst [vmem:[%s712_s17 + $0x38] sm:$0xff] %v209_v23 }
 0x10c   : > { %v210_v24 = vpop.trf.xlu0 }
 0x10d   : > { %226 = vst [vmem:[%s712_s17 + $0x40] sm:$0xff] %v210_v24 }
 0x114   : > { %v211_v25 = vpop.trf.xlu0 }
 0x115   : > { %227 = vst [vmem:[%s712_s17 + $0x48] sm:$0xff] %v211_v25 }
 0x11c   : > { %v212_v26 = vpop.trf.xlu0 }
 0x11d   : > { %228 = vst [vmem:[%s712_s17 + $0x50] sm:$0xff] %v212_v26 }
 0x124   : > { %v213_v27 = vpop.trf.xlu0 }
 0x125   : > { %229 = vst [vmem:[%s712_s17 + $0x58] sm:$0xff] %v213_v27 }
 0x12c   : > { %v214_v28 = vpop.trf.xlu0 }
 0x12d   : > { %230 = vst [vmem:[%s712_s17 + $0x60] sm:$0xff] %v214_v28 }
 0x134   : > { %v215_v29 = vpop.trf.xlu0 }
 0x135   : > { %231 = vst [vmem:[%s712_s17 + $0x68] sm:$0xff] %v215_v29 }
 0x13c   : > { %v216_v30 = vpop.trf.xlu0 }
 0x13d   : > { %232 = vst [vmem:[%s712_s17 + $0x70] sm:$0xff] %v216_v30 }
 0x144   : > { %v217_v31 = vpop.trf.xlu0 }
 0x145   : > { %233 = vst [vmem:[%s712_s17 + $0x78] sm:$0xff] %v217_v31 }
 0x146   : > { %504 = shalt.err (!%p501_p11)
}
 0x147   : > { %s580_s28 = smov 128   ;;  %s581_s17 = smov 8  }
 0x148   : > { %366 = dma.vmem_to_hbm [thread:$0]  (%p657_p9), %s251_s15, 2048, %s253_s19, %s235_s23, %s580_s28, %s580_s28, %s581_s17  }
 0x149 PF: > { %p377_p13 = scmp.ge.s32.totalorder %s575_s13, 2  ;;  %s267_s21 = sand.u32 1, %s547_s6  }
 0x14a   : > { %s268_s26 = scalar_lea.sflag [#allocation4], %s267_s21 }
 0x14b   : > { %p373_p0 = pnand %p377_p13, %p663_p12 }
 0x14d   : > { %p374_p1 = pneg %p373_p0 }
 0x14f   : > { %542 = dma.done.wait (%p374_p1), %s268_s26, 2048  }
 0x150   : > { %544 = vsyncadd (%p374_p1), %s268_s26, 4294965248  ;;  %s17_s13 = sadd.s32 1, %s575_s13   ;;  %s783_s22 = sld [smem:[#allocation8_spill]] }
 0x151   : > { %p14_p2 = scmp.ge.s32.totalorder %s17_s13, 6   ;;  %s784_s6 = smov %s551_s7 }
 0x152   : > { %s785_s7 = smov %s555_s8  ;;  %s786_s8 = smov %s670_s27 }
 0x153   : > { %s787_s9 = smov %s567_s11  ;;  %s788_s10 = smov %s571_s12 }
 0x154   : > { %s789_s11 = smov %s792_s16  ;;  %16 = sbr.rel (!%p14_p2) target bundleno = 7 (0x7), region = 69 }
 0x156   : > { %s790_s12 = smov %s783_s22 }
 0x159   :  { %274 = vsyncpa [#allocation3], 1 }
 0x15a   :  { %276 = vsyncpa [#allocation3 + $0x1], 1 }
 0x15b   :  { %277 = vsyncpa [#allocation4], 1 }
 0x15c   :  { %279 = vsyncpa [#allocation4 + $0x1], 1 }

</bundles_post_ra>
